<compile_context>
chip_gen: v6e
topology: v6e:2x2x1
jax: 0.10.0
libtpu: 0.0.40
codegen_flags: <defaults>
</compile_context>

<pallas_src>
import functools

import jax
import jax.numpy as jnp
from jax.experimental import pallas as pl
from jax.experimental.pallas import tpu as pltpu

N_STATES = 2
N_HIDDEN = 50
N_ACTIONS = 4

H_SUB = 64    # hidden dim padded to a multiple of 8 sublanes (50 -> 64)
A_SUB = 8     # action dim padded to 8 sublanes (4 -> 8)
LANE = 128    # lane width; batch tiles are multiples of this


def _round_up(n, m):
    return ((n + m - 1) // m) * m


def _net_kernel(x_ref, w1_ref, b1_ref, w2_ref, b2_ref, out_ref):
    # Batch-on-lane layout:
    #   x_ref  : (N_STATES, TB) f32   -- batch along lanes
    #   w1_ref : (H_SUB, N_STATES)
    #   b1_ref : (H_SUB, 1)
    #   w2_ref : (A_SUB, H_SUB)
    #   b2_ref : (A_SUB, 1)
    #   out_ref: (A_SUB, TB)
    x = x_ref[...]
    w1 = w1_ref[...]

    # fc1: contraction depth is only 2 -> two VPU broadcast FMAs (skip MXU).
    h = (w1[:, 0:1] * x[0:1, :]
         + w1[:, 1:2] * x[1:2, :]
         + b1_ref[...])                       # (H_SUB, TB)
    h = jnp.maximum(h, 0.0)                   # ReLU; zero-padded rows stay 0

    # fc2 on the MXU: tiny M=8, K=64 matmul, f32 accumulation.
    o = jnp.dot(w2_ref[...], h, preferred_element_type=jnp.float32)
    out_ref[...] = (o + b2_ref[...]).astype(out_ref.dtype)


@functools.partial(jax.jit, static_argnames=("block_b",))
def net_forward(x, w1, b1, w2, b2, *, block_b=8192):
    """x: (B, 2) f32; w1: (2, 50); b1: (1, 50); w2: (50, 4); b2: (1, 4)
    -> (B, 4) f32."""
    # TODO(synk): for the single-step "acting" path (B ~ 1), fuse this forward
    # into the surrounding XLA graph instead of paying a pallas_call launch;
    # this kernel targets batched replay / multi-env evaluation.
    B = x.shape[0]

    # Batch is tiled along lanes: pad to a multiple of 128, then to a multiple
    # of the (lane-aligned) batch tile so the grid divides evenly.
    b_pad = _round_up(B, LANE)
    tb = min(_round_up(block_b, LANE), b_pad)
    b_pad = _round_up(b_pad, tb)

    # Batch-on-lane input; feature-on-sublane weights. Zero padding -> exact.
    x_t = jnp.pad(x.astype(jnp.float32).T, ((0, 0), (0, b_pad - B)))
    w1_t = jnp.pad(w1.astype(jnp.float32).T,
                   ((0, H_SUB - N_HIDDEN), (0, 0)))                   # (64, 2)
    b1_t = jnp.pad(b1.astype(jnp.float32).reshape(N_HIDDEN, 1),
                   ((0, H_SUB - N_HIDDEN), (0, 0)))                   # (64, 1)
    w2_t = jnp.pad(w2.astype(jnp.float32).T,
                   ((0, A_SUB - N_ACTIONS), (0, H_SUB - N_HIDDEN)))   # (8, 64)
    b2_t = jnp.pad(b2.astype(jnp.float32).reshape(N_ACTIONS, 1),
                   ((0, A_SUB - N_ACTIONS), (0, 0)))                  # (8, 1)

    grid = (b_pad // tb,)

    # Advisory cost hint (real work, not padded work) for XLA's scheduler.
    cost = pl.CostEstimate(
        flops=2 * B * (N_STATES * N_HIDDEN + N_HIDDEN * N_ACTIONS),
        transcendentals=0,
        bytes_accessed=4 * (B * N_STATES + B * N_ACTIONS
                            + N_STATES * N_HIDDEN + N_HIDDEN
                            + N_HIDDEN * N_ACTIONS + N_ACTIONS),
    )

    out_t = pl.pallas_call(
        _net_kernel,
        out_shape=jax.ShapeDtypeStruct((A_SUB, b_pad), jnp.float32),
        grid=grid,
        in_specs=[
            pl.BlockSpec((N_STATES, tb), lambda i: (0, i)),     # x: batch-tiled
            pl.BlockSpec((H_SUB, N_STATES), lambda i: (0, 0)),  # w1: resident
            pl.BlockSpec((H_SUB, 1), lambda i: (0, 0)),         # b1
            pl.BlockSpec((A_SUB, H_SUB), lambda i: (0, 0)),     # w2
            pl.BlockSpec((A_SUB, 1), lambda i: (0, 0)),         # b2
        ],
        out_specs=pl.BlockSpec((A_SUB, tb), lambda i: (0, i)),  # lane-dense
        compiler_params=pltpu.CompilerParams(
            dimension_semantics=("parallel",)),  # shard batch tiles across TCs
        cost_estimate=cost,
    )(x_t, w1_t, b1_t, w2_t, b2_t)

    # Strip padding and return in the PyTorch (B, N_ACTIONS) layout.
    return out_t[:N_ACTIONS, :B].T


def init_params(key):
    """Deterministic init matching the PyTorch module:
    weights ~ N(0, 0.1); biases use nn.Linear's default U(-1/sqrt(fan_in), ...)."""
    k1, k2, k3, k4 = jax.random.split(key, 4)
    w1 = 0.1 * jax.random.normal(k1, (N_STATES, N_HIDDEN), dtype=jnp.float32)
    w2 = 0.1 * jax.random.normal(k2, (N_HIDDEN, N_ACTIONS), dtype=jnp.float32)
    bound1 = 1.0 / jnp.sqrt(jnp.float32(N_STATES))
    bound2 = 1.0 / jnp.sqrt(jnp.float32(N_HIDDEN))
    b1 = jax.random.uniform(k3, (1, N_HIDDEN), dtype=jnp.float32,
                            minval=-bound1, maxval=bound1)
    b2 = jax.random.uniform(k4, (1, N_ACTIONS), dtype=jnp.float32,
                            minval=-bound2, maxval=bound2)
    return w1, b1, w2, b2


def reference_forward(x, w1, b1, w2, b2):
    h = jnp.maximum(jnp.dot(x, w1, precision="highest") + b1, 0.0)
    return jnp.dot(h, w2, precision="highest") + b2


if __name__ == "__main__":
    key = jax.random.PRNGKey(0)
    kx, kp = jax.random.split(key)
    w1, b1, w2, b2 = init_params(kp)

    # Small single-tile case.
    batch = 8
    x = jax.random.normal(kx, (batch, N_STATES), dtype=jnp.float32)
    out = jax.block_until_ready(net_forward(x, w1, b1, w2, b2))
    ref = reference_forward(x, w1, b1, w2, b2)
    assert out.shape == (batch, N_ACTIONS)
    assert jnp.allclose(out, ref, atol=1e-5, rtol=1e-5)

    # Ragged batch with a multi-step grid (exercises tiling + padding strip).
    batch2 = 300
    x2 = jax.random.normal(kx, (batch2, N_STATES), dtype=jnp.float32)
    out2 = jax.block_until_ready(net_forward(x2, w1, b1, w2, b2, block_b=256))
    ref2 = reference_forward(x2, w1, b1, w2, b2)
    assert out2.shape == (batch2, N_ACTIONS)
    assert jnp.allclose(out2, ref2, atol=1e-5, rtol=1e-5)

    print("KERNEL_OK")
</pallas_src>

<mosaic_0001>
module attributes {stable_mosaic.version = 11 : i64} {
  func.func @_net_kernel(%arg0: i32, %arg1: memref<2x128xf32, #tpu.memory_space<vmem>>, %arg2: memref<64x2xf32, #tpu.memory_space<vmem>>, %arg3: memref<64x1xf32, #tpu.memory_space<vmem>>, %arg4: memref<8x64xf32, #tpu.memory_space<vmem>>, %arg5: memref<8x1xf32, #tpu.memory_space<vmem>>, %arg6: memref<8x128xf32, #tpu.memory_space<vmem>>) attributes {dimension_semantics = [#tpu.dimension_semantics<parallel>], iteration_bounds = array<i64: 1>, scalar_prefetch = 0 : i64, scratch_operands = 0 : i64, tpu.core_type = #tpu.core_type<tc>, window_params = [{transform_indices = @transform_0, window_bounds = array<i64: 2, 128>}, {pipeline_mode = #tpu.pipeline_mode<synchronous>, transform_indices = @transform_1, window_bounds = array<i64: 64, 2>}, {pipeline_mode = #tpu.pipeline_mode<synchronous>, transform_indices = @transform_2, window_bounds = array<i64: 64, 1>}, {pipeline_mode = #tpu.pipeline_mode<synchronous>, transform_indices = @transform_3, window_bounds = array<i64: 8, 64>}, {pipeline_mode = #tpu.pipeline_mode<synchronous>, transform_indices = @transform_4, window_bounds = array<i64: 8, 1>}, {transform_indices = @transform_5, window_bounds = array<i64: 8, 128>}]} {
    %c0 = arith.constant 0 : index
    %c0_0 = arith.constant 0 : index
    %0 = vector.load %arg1[%c0, %c0_0] : memref<2x128xf32, #tpu.memory_space<vmem>>, vector<2x128xf32>
    %c0_1 = arith.constant 0 : index
    %c0_2 = arith.constant 0 : index
    %1 = vector.load %arg2[%c0_1, %c0_2] : memref<64x2xf32, #tpu.memory_space<vmem>>, vector<64x2xf32>
    %2 = vector.extract_strided_slice %1 {offsets = [0, 0], sizes = [64, 1], strides = [1, 1]} : vector<64x2xf32> to vector<64x1xf32>
    %3 = vector.extract_strided_slice %0 {offsets = [0, 0], sizes = [1, 128], strides = [1, 1]} : vector<2x128xf32> to vector<1x128xf32>
    %4 = vector.broadcast %2 : vector<64x1xf32> to vector<64x128xf32>
    %5 = vector.broadcast %3 : vector<1x128xf32> to vector<64x128xf32>
    %6 = arith.mulf %4, %5 : vector<64x128xf32>
    %7 = vector.extract_strided_slice %1 {offsets = [0, 1], sizes = [64, 1], strides = [1, 1]} : vector<64x2xf32> to vector<64x1xf32>
    %8 = vector.extract_strided_slice %0 {offsets = [1, 0], sizes = [1, 128], strides = [1, 1]} : vector<2x128xf32> to vector<1x128xf32>
    %9 = vector.broadcast %7 : vector<64x1xf32> to vector<64x128xf32>
    %10 = vector.broadcast %8 : vector<1x128xf32> to vector<64x128xf32>
    %11 = arith.mulf %9, %10 : vector<64x128xf32>
    %12 = arith.addf %6, %11 : vector<64x128xf32>
    %c0_3 = arith.constant 0 : index
    %c0_4 = arith.constant 0 : index
    %13 = vector.load %arg3[%c0_3, %c0_4] : memref<64x1xf32, #tpu.memory_space<vmem>>, vector<64x1xf32>
    %14 = vector.broadcast %13 : vector<64x1xf32> to vector<64x128xf32>
    %15 = arith.addf %12, %14 : vector<64x128xf32>
    %cst = arith.constant 0.000000e+00 : f32
    %16 = vector.broadcast %cst : f32 to vector<64x128xf32>
    %17 = arith.maximumf %15, %16 : vector<64x128xf32>
    %c0_5 = arith.constant 0 : index
    %c0_6 = arith.constant 0 : index
    %18 = vector.load %arg4[%c0_5, %c0_6] : memref<8x64xf32, #tpu.memory_space<vmem>>, vector<8x64xf32>
    %cst_7 = arith.constant dense<0.000000e+00> : vector<8x128xf32>
    %19 = tpu.matmul %18, %17, %cst_7 {dimension_numbers = #tpu.dot_dimension_numbers<[1], [0], [0], [1], [0, 0, 1, 1], [], []>} : vector<8x64xf32>, vector<64x128xf32>, vector<8x128xf32> -> vector<8x128xf32>
    %c0_8 = arith.constant 0 : index
    %c0_9 = arith.constant 0 : index
    %20 = vector.load %arg5[%c0_8, %c0_9] : memref<8x1xf32, #tpu.memory_space<vmem>>, vector<8x1xf32>
    %21 = vector.broadcast %20 : vector<8x1xf32> to vector<8x128xf32>
    %22 = arith.addf %19, %21 : vector<8x128xf32>
    %c0_10 = arith.constant 0 : index
    %c0_11 = arith.constant 0 : index
    %23 = vector.load %arg6[%c0_10, %c0_11] : memref<8x128xf32, #tpu.memory_space<vmem>>, vector<8x128xf32>
    tpu.vector_store %arg6[%c0_10, %c0_11], %22 {strides = array<i32>} : memref<8x128xf32, #tpu.memory_space<vmem>>, vector<8x128xf32>,
    return
  }
  func.func @transform_0(%arg0: i32) -> (i32, i32) {
    %c0_i32 = arith.constant 0 : i32
    %c0_i32_0 = arith.constant 0 : i32
    return %c0_i32, %arg0 : i32, i32
  }
  func.func @transform_1(%arg0: i32) -> (i32, i32) {
    %c0_i32 = arith.constant 0 : i32
    %c0_i32_0 = arith.constant 0 : i32
    %c0_i32_1 = arith.constant 0 : i32
    return %c0_i32, %c0_i32_0 : i32, i32
  }
  func.func @transform_2(%arg0: i32) -> (i32, i32) {
    %c0_i32 = arith.constant 0 : i32
    %c0_i32_0 = arith.constant 0 : i32
    %c0_i32_1 = arith.constant 0 : i32
    return %c0_i32, %c0_i32_0 : i32, i32
  }
  func.func @transform_3(%arg0: i32) -> (i32, i32) {
    %c0_i32 = arith.constant 0 : i32
    %c0_i32_0 = arith.constant 0 : i32
    %c0_i32_1 = arith.constant 0 : i32
    return %c0_i32, %c0_i32_0 : i32, i32
  }
  func.func @transform_4(%arg0: i32) -> (i32, i32) {
    %c0_i32 = arith.constant 0 : i32
    %c0_i32_0 = arith.constant 0 : i32
    %c0_i32_1 = arith.constant 0 : i32
    return %c0_i32, %c0_i32_0 : i32, i32
  }
  func.func @transform_5(%arg0: i32) -> (i32, i32) {
    %c0_i32 = arith.constant 0 : i32
    %c0_i32_0 = arith.constant 0 : i32
    return %c0_i32, %arg0 : i32, i32
  }
}

</mosaic_0001>

<bundles_post_ra>
// kernel: net_forward.1
= control target key start
LH: loop header
LB: loop body
LE: loop exit
PB: predicated region body
PF: predicated region fallthrough
CT: control target
= control target key end

     0   :  { %v327_v0 = vmov 1   ;;  %v328_v1 = vmov 0   ;;  %v329_v9 = vmov 0.0   ;;  %vm330_vm0 = vmmov 0   ;;  %s430_s1 = inlined_call_operand.vmem [shape: f32[64,2], index: 1, kind: input, shape index: {}]   ;;  %s431_s2 = inlined_call_operand.vmem [shape: f32[64,1], index: 2, kind: input, shape index: {}]   ;;  %s432_s4 = inlined_call_operand.vmem [shape: f32[8,1], index: 4, kind: input, shape index: {}]   ;;  %s433_s0 = inlined_call_operand.vmem [shape: f32[2,128], index: 0, kind: input, shape index: {}]   ;;  %s434_s3 = inlined_call_operand.vmem [shape: f32[8,64], index: 3, kind: input, shape index: {}]   ;;  %s435_s5 = inlined_call_operand.vmem [shape: f32[8,128], index: 5, kind: output, shape index: {}]  }
   0x1   :  { %316 = vset.pattern.permute.xlu0 %v327_v0  ;;  %317 = vset.pattern.permute.xlu1 %v328_v1  ;;  %v28_v2 = vld [vmem:[%s430_s1 + $0x38] sm:$0xff]  ;;  %v27_v3 = vld [vmem:[%s430_s1 + $0x30] sm:$0xff]  ;;  %v26_v4 = vld [vmem:[%s430_s1 + $0x28] sm:$0xff]  ;;  %v69_v22 = vlaneseq  ;;  %vm204_vm1 = vcmask 523264  }
   0x2   :  { %110 = vperm.xlu0 %316, %v28_v2   ;;  %61 = vperm.xlu1 %317, %v27_v3   ;;  %v23_v5 = vld [vmem:[%s430_s1 + $0x10] sm:$0xff]  ;;  %v22_v6 = vld [vmem:[%s430_s1 + $0x8] sm:$0xff]  ;;  %v140_v7 = vld [vmem:[%s431_s2 + $0x38] sm:$0xff] }
   0x3   :  { %v25_v8 = vld [vmem:[%s430_s1 + $0x20] sm:$0xff]  ;;  %293 = vmatprep.subr.mxu0 %v329_v9  ;;  %v139_v10 = vld [vmem:[%s431_s2 + $0x30] sm:$0xff]  ;;  %v24_v11 = vld [vmem:[%s430_s1 + $0x18] sm:$0xff]  ;;  %309 = vmatprep.mubr.msk.f32.mxu0 %vm330_vm0, %v329_v9  ;;  %v70_v25 = vshrl.u32 %v69_v22, 7 }
   0x4   :  { %v138_v12 = vld [vmem:[%s431_s2 + $0x28] sm:$0xff]  ;;  %v21_v13 = vld [vmem:[%s430_s1] sm:$0xff]  ;;  %v136_v17 = vld [vmem:[%s431_s2 + $0x18] sm:$0xff] }
   0x5   :  { %v134_v14 = vld [vmem:[%s431_s2 + $0x8] sm:$0xff]  ;;  %v137_v15 = vld [vmem:[%s431_s2 + $0x20] sm:$0xff]  ;;  %v135_v18 = vld [vmem:[%s431_s2 + $0x10] sm:$0xff]  ;;  %v115_v27 = vsub.s32 1, %v70_v25  ;;  %v71_v29 = vsub.s32 0, %v70_v25 }
   0x6   :  { %318 = vset.pattern.permute.xlu1 %v327_v0  ;;  %102 = vperm.xlu0 %316, %v26_v4   ;;  %v198_v16 = vld [vmem:[%s432_s4] sm:$0xff] }
   0x7   :  { %106 = vperm.xlu1 %318, %v27_v3   ;;  %v133_v19 = vld [vmem:[%s431_s2] sm:$0xff] }
   0x8   :  { %v20_v31 = vld [vmem:[%s433_s0] sm:$0x3] }
   0x9   :  { %v116_v32 = vrot.slane %v20_v31, %v115_v27  ;;  %v72_v34 = vrot.slane %v20_v31, %v71_v29 }
   0xa   :  { %90 = vperm.xlu0 %316, %v23_v5  }
   0xb   :  { %319 = vset.pattern.permute.xlu1 %v328_v1 }
   0xc   :  { %56 = vperm.xlu1 %319, %v26_v4  }
   0xe   :  { %86 = vperm.xlu0 %316, %v22_v6  }
  0x10   :  { %178 = vperm.xlu1 %319, %v140_v7  }
  0x12   :  { %324 = vset.pattern.permute.xlu0 %v328_v1 }
  0x13   :  { %66 = vperm.xlu0 %324, %v28_v2  }
  0x14   :  { %320 = vset.pattern.permute.xlu1 %v327_v0 }
  0x15   :  { %98 = vperm.xlu1 %320, %v25_v8  }
  0x17   :  { %51 = vperm.xlu0 %324, %v25_v8  }
  0x19   :  { %321 = vset.pattern.permute.xlu1 %v328_v1 }
  0x1a   :  { %173 = vperm.xlu1 %321, %v139_v10  }
  0x1b   :  { %46 = vperm.xlu0 %324, %v24_v11  }
  0x1e   :  { %322 = vset.pattern.permute.xlu1 %v327_v0 }
  0x1f   :  { %94 = vperm.xlu1 %322, %v24_v11   ;;  %168 = vperm.xlu0 %324, %v138_v12  }
  0x23   :  { %323 = vset.pattern.permute.xlu1 %v328_v1  ;;  %31 = vperm.xlu0 %324, %v21_v13  }
  0x24   :  { %41 = vperm.xlu1 %323, %v23_v5  }
  0x27   :  { %148 = vperm.xlu0 %324, %v134_v14  }
  0x28   :  { %163 = vperm.xlu1 %323, %v137_v15  }
  0x2b   :  { %201 = vperm.xlu0 %324, %v198_v16  }
  0x2c   :  { %36 = vperm.xlu1 %323, %v22_v6  }
  0x30   :  { %158 = vperm.xlu1 %323, %v136_v17  }
  0x34   :  { %325 = vset.pattern.permute.xlu1 %v327_v0 }
  0x35   :  { %82 = vperm.xlu1 %325, %v21_v13  }
  0x39   :  { %326 = vset.pattern.permute.xlu1 %v328_v1 }
  0x3a   :  { %153 = vperm.xlu1 %326, %v135_v18  }
  0x3e   :  { %143 = vperm.xlu1 %326, %v133_v19  }
  0x7d   :  { %v62_v20 = vpop.permute.xlu1 %61  ;;  %v111_v21 = vpop.permute.xlu0 %110 }
  0x7e   :  { %v124_v35 = vmul.f32 %v116_v32, %v111_v21  ;;  %v79_v41 = vmul.f32 %v72_v34, %v62_v20 }
  0x81   :  { %v103_v23 = vpop.permute.xlu0 %102 }
  0x82   :  { %v107_v24 = vpop.permute.xlu1 %106  ;;  %v122_v45 = vmul.f32 %v116_v32, %v103_v23 }
  0x83   :  { %v123_v38 = vmul.f32 %v116_v32, %v107_v24 }
  0x85   :  { %v91_v26 = vpop.permute.xlu0 %90  ;;  %v131_v44 = vadd.f32 %v123_v38, %v79_v41 }
  0x86   :  { %v119_v13 = vmul.f32 %v116_v32, %v91_v26  ;;  %v197_v26 = vld [vmem:[%s434_s3] sm:$0xff] }
  0x87   :  { %v57_v28 = vpop.permute.xlu1 %56 }
  0x88   :  { %v78_v46 = vmul.f32 %v72_v34, %v57_v28 }
  0x89   :  { %v87_v30 = vpop.permute.xlu0 %86 }
  0x8a   :  { %v130_v52 = vadd.f32 %v122_v45, %v78_v46  ;;  %v118_v10 = vmul.f32 %v116_v32, %v87_v30 }
  0x8b   :  { %v179_v33 = vpop.permute.xlu1 %178 }
  0x8e   :  { %v67_v36 = vpop.permute.xlu0 %66 }
  0x8f   :  { %v80_v37 = vmul.f32 %v72_v34, %v67_v36 }
  0x90   :  { %v99_v39 = vpop.permute.xlu1 %98 }
  0x91   :  { %v132_v40 = vadd.f32 %v124_v35, %v80_v37  ;;  %v121_v59 = vmul.f32 %v116_v32, %v99_v39 }
  0x92   :  { %v52_v42 = vpop.permute.xlu0 %51 }
  0x93   :  { %v188_v43 = vadd.f32 %v179_v33, %v132_v40  ;;  %v77_v57 = vmul.f32 %v72_v34, %v52_v42 }
  0x95   :  { %v174_v47 = vpop.permute.xlu1 %173  ;;  %v196_v48 = vmax.f32 %v188_v43, 0.0  ;;  %v129_v60 = vadd.f32 %v121_v59, %v77_v57 }
  0x96   :  { %v187_v49 = vadd.f32 %v174_v47, %v131_v44  ;;  %v47_v50 = vpop.permute.xlu0 %46 }
  0x97   :  { %294 = vmatpush3.msra.mxu0 %v196_v48  ;;  %v76_v63 = vmul.f32 %v72_v34, %v47_v50 }
  0x98   :  { %v195_v51 = vmax.f32 %v187_v49, 0.0  ;;  %295 = vmatprep.subr.mxu0 %v329_v9 }
  0x9a   :  { %v95_v53 = vpop.permute.xlu1 %94  ;;  %v169_v54 = vpop.permute.xlu0 %168  ;;  %296 = vmatpush3.msra.mxu0 %v195_v51 }
  0x9b   :  { %v186_v55 = vadd.f32 %v169_v54, %v130_v52  ;;  %297 = vmatprep.subr.mxu0 %v329_v9  ;;  %v120_v0 = vmul.f32 %v116_v32, %v95_v53 }
  0x9d   :  { %v194_v56 = vmax.f32 %v186_v55, 0.0  ;;  %v128_v3 = vadd.f32 %v120_v0, %v76_v63 }
  0x9e   :  { %v32_v8 = vpop.permute.xlu0 %31 }
  0x9f   :  { %v42_v58 = vpop.permute.xlu1 %41  ;;  %298 = vmatpush3.msra.mxu0 %v194_v56  ;;  %v73_v19 = vmul.f32 %v72_v34, %v32_v8 }
  0xa0   :  { %299 = vmatprep.subr.mxu0 %v329_v9  ;;  %v75_v11 = vmul.f32 %v72_v34, %v42_v58 }
  0xa2   :  { %v127_v16 = vadd.f32 %v119_v13, %v75_v11  ;;  %v149_v17 = vpop.permute.xlu0 %148 }
  0xa3   :  { %v164_v61 = vpop.permute.xlu1 %163 }
  0xa4   :  { %v185_v62 = vadd.f32 %v164_v61, %v129_v60 }
  0xa6   :  { %v193_v1 = vmax.f32 %v185_v62, 0.0  ;;  %v202_v29 = vpop.permute.xlu0 %201 }
  0xa7   :  { %v37_v2 = vpop.permute.xlu1 %36 }
  0xa8   :  { %300 = vmatpush3.msra.mxu0 %v193_v1  ;;  %v74_v6 = vmul.f32 %v72_v34, %v37_v2 }
  0xa9   :  { %301 = vmatprep.subr.mxu0 %v329_v9 }
  0xaa   :  { %v126_v14 = vadd.f32 %v118_v10, %v74_v6 }
  0xab   :  { %v159_v4 = vpop.permute.xlu1 %158 }
  0xac   :  { %v184_v5 = vadd.f32 %v159_v4, %v128_v3  ;;  %v182_v21 = vadd.f32 %v149_v17, %v126_v14 }
  0xae   :  { %v192_v7 = vmax.f32 %v184_v5, 0.0  ;;  %v190_v27 = vmax.f32 %v182_v21, 0.0 }
  0xb0   :  { %v83_v12 = vpop.permute.xlu1 %82  ;;  %302 = vmatpush3.msra.mxu0 %v192_v7 }
  0xb1   :  { %303 = vmatprep.subr.mxu0 %v329_v9  ;;  %v117_v15 = vmul.f32 %v116_v32, %v83_v12 }
  0xb3   :  { %v125_v23 = vadd.f32 %v117_v15, %v73_v19 }
  0xb5   :  { %v154_v18 = vpop.permute.xlu1 %153 }
  0xb6   :  { %v183_v20 = vadd.f32 %v154_v18, %v127_v16 }
  0xb8   :  { %v191_v22 = vmax.f32 %v183_v20, 0.0 }
  0xb9   :  { %v144_v24 = vpop.permute.xlu1 %143 }
  0xba   :  { %v181_v25 = vadd.f32 %v144_v24, %v125_v23  ;;  %304 = vmatpush3.msra.mxu0 %v191_v22 }
  0xbb   :  { %305 = vmatprep.subr.mxu0 %v329_v9 }
  0xbc   :  { %v189_v28 = vmax.f32 %v181_v25, 0.0  ;;  %306 = vmatpush3.msra.mxu0 %v190_v27 }
  0xbd   :  { %307 = vmatprep.subr.mxu0 %v329_v9 }
  0xbe   :  { %308 = vmatpush3.msra.mxu0 %v189_v28 }
  0xbf   :  { %310 = vmatmul.mubr.msk.f32.vlgmr.msra.gmra.mxu0 %vm204_vm1, %v197_v26 }
 0x17f   :  { %v274_v30 = vpop.f32.mrf.mxu0 }
 0x180   :  { %v275_v31 = vadd.f32 %v274_v30, %v202_v29 }
 0x181   :  { %v311_v32 = vpop.f32.mrf.mxu0 }
 0x182   :  { %278 = vst [vmem:[%s435_s5] sm:$0xff] %v275_v31 }

</bundles_post_ra>
